<compile_context>
chip_gen: v6e
topology: v6e:2x2x1
jax: 0.10.0
libtpu: 0.0.40
codegen_flags: <defaults>
</compile_context>

<pallas_src>
import numpy as np
import jax
import jax.numpy as jnp
from jax import lax
from jax.experimental import pallas as pl
from jax.experimental.pallas import tpu as pltpu


# ----------------------------------------------------------------------------
# positional-encoding tables (plain numpy glue, built once at module init)
# ----------------------------------------------------------------------------
def get_1d_sincos_pos_embed_from_grid(embed_dim, pos):
    assert embed_dim % 2 == 0
    omega = np.arange(embed_dim // 2, dtype=np.float64) / (embed_dim / 2.0)
    omega = 1.0 / (10000.0 ** omega)
    pos = pos.reshape(-1)
    out = np.einsum("m,d->md", pos, omega)
    return np.concatenate([np.sin(out), np.cos(out)], axis=1)


def get_2d_sincos_pos_embed(embed_dim, grid_size):
    # standard MAE 2d sin-cos positional embedding, shape (grid_size**2, embed_dim)
    grid_h = np.arange(grid_size, dtype=np.float64)
    grid_w = np.arange(grid_size, dtype=np.float64)
    grid = np.meshgrid(grid_w, grid_h)  # w goes first
    grid = np.stack(grid, axis=0).reshape(2, 1, grid_size, grid_size)
    emb_h = get_1d_sincos_pos_embed_from_grid(embed_dim // 2, grid[0])
    emb_w = get_1d_sincos_pos_embed_from_grid(embed_dim // 2, grid[1])
    return np.concatenate([emb_h, emb_w], axis=1).astype(np.float32)


def sinusoidal_pos_encoding(max_len, d_model):
    # classic transformer PE table (dropout in PositionalEncoding is identity at inference)
    position = np.arange(max_len, dtype=np.float64)[:, None]
    div_term = np.exp(np.arange(0, d_model, 2, dtype=np.float64)
                      * (-np.log(10000.0) / d_model))
    pe = np.zeros((max_len, d_model), dtype=np.float64)
    pe[:, 0::2] = np.sin(position * div_term)
    pe[:, 1::2] = np.cos(position * div_term)
    return pe.astype(np.float32)


# ----------------------------------------------------------------------------
# random masking indices (plain JAX)
# TODO(synk): rand + argsort shuffling has no clean Pallas equivalent; kept in JAX.
# ----------------------------------------------------------------------------
def get_indices(key, data_shape, num_remain):
    noise = jax.random.uniform(key, data_shape)
    shuffle_idx = jnp.argsort(noise, axis=-1)
    remain_idx = shuffle_idx[..., :num_remain]
    masked_idx = shuffle_idx[..., num_remain:]
    revert_idx = jnp.argsort(shuffle_idx, axis=-1)
    return remain_idx, masked_idx, revert_idx


# ----------------------------------------------------------------------------
# tuning knobs shared by both kernel paths
# ----------------------------------------------------------------------------
_ROW_DMA_MIN_D = 256                 # per-row DMA only pays once a row is >= ~1 KiB
_ONEHOT_VMEM_BUDGET = 24 * 1024 * 1024   # per-step block budget: fits v7x (64 MiB/TC)
                                         # with double buffering; sweep higher on v5e/v6e.


def _vmem_limit_bytes(working_set_bytes):
    # Explicit scoped-VMEM budget (feedback #4): stay well under v7x's 64 MiB/TC
    # while still allowing bigger-than-default tiles; raise toward ~100 MiB on
    # v5e/v6e (128 MiB VMEM) when sweeping block sizes.
    return int(min(48 * 1024 * 1024, max(32 * 1024 * 1024, 2 * working_set_bytes)))


def _pick_batch_tile(B, N, R, D, itemsize=4):
    # largest divisor of B whose double-buffered (val + out + idx) blocks fit the budget
    per_batch = 2 * (N * D + R * D + R) * itemsize
    cap = max(1, min(B, _ONEHOT_VMEM_BUDGET // max(per_batch, 1)))
    for bt in range(int(cap), 0, -1):
        if B % bt == 0:
            return bt
    return 1


# ----------------------------------------------------------------------------
# Path A: batched one-hot MXU gather (small D).  Grid over batch tiles.
# ----------------------------------------------------------------------------
def _onehot_gather_kernel(idx_ref, val_ref, pos_ref, out_ref):
    # idx_ref: (Bt, R, 1) int32   val_ref: (Bt, N, D)   pos_ref: (N, D)
    # out_ref: (Bt, R, D)
    idx = idx_ref[...]                                        # (Bt, R, 1)
    bt, r_len, _ = idx.shape
    n_len = val_ref.shape[1]
    d_len = pos_ref.shape[1]

    iota = lax.broadcasted_iota(jnp.int32, (bt, r_len, n_len), 2)
    onehot = (iota == idx).astype(jnp.float32)                # exact 0/1 rows

    # gather-then-add (feedback #6): pick the kept rows of val and pos with the
    # (otherwise idle) MXU, add only the surviving R*D elements.  f32 one-hot
    # matmul is bit-exact (feedback #7).
    g_val = jnp.einsum("brn,bnd->brd", onehot, val_ref[...],
                       preferred_element_type=jnp.float32)    # (Bt, R, D)
    g_pos = jnp.dot(onehot.reshape(bt * r_len, n_len), pos_ref[...],
                    preferred_element_type=jnp.float32).reshape(bt, r_len, d_len)
    out_ref[...] = (g_val + g_pos).astype(out_ref.dtype)


def _onehot_call(val, pos, idx):
    B, N, D = val.shape
    R = idx.shape[-1]
    bt = _pick_batch_tile(B, N, R, D)                         # feedback #3: Bt batches/step
    idx3 = idx.reshape(B, R, 1)

    working_set = 2 * bt * (N * D + R * D + R) * 4 + 2 * N * D * 4
    flops = 4 * B * R * N * D                                 # two one-hot matmuls
    bytes_accessed = 4 * (B * N * D + N * D + B * R * D + B * R)

    return pl.pallas_call(
        _onehot_gather_kernel,
        out_shape=jax.ShapeDtypeStruct((B, R, D), val.dtype),
        grid=(B // bt,),
        in_specs=[
            pl.BlockSpec((bt, R, 1), lambda i: (i, 0, 0)),
            pl.BlockSpec((bt, N, D), lambda i: (i, 0, 0)),
            pl.BlockSpec((N, D), lambda i: (0, 0)),           # pos resident in VMEM
        ],
        out_specs=pl.BlockSpec((bt, R, D), lambda i: (i, 0, 0)),
        compiler_params=pltpu.CompilerParams(
            dimension_semantics=("parallel",),                # v7x 2-TC split (feedback #4)
            vmem_limit_bytes=_vmem_limit_bytes(working_set)),
        cost_estimate=pl.CostEstimate(flops=int(flops), transcendentals=0,
                                      bytes_accessed=int(bytes_accessed)),
    )(idx3, val, pos)


# ----------------------------------------------------------------------------
# Path B: index-driven row DMA (wide D).  Only the R kept rows leave HBM.
# ----------------------------------------------------------------------------
def _row_dma_gather_kernel(idx_ref, val_hbm, pos_ref, out_ref, vbuf, pbuf, sems):
    # idx_ref : (B, R) int32 in SMEM (scalar-prefetched)      [feedback #1]
    # val_hbm : (B, N, D) raw HBM ref (memory_space=pl.ANY)   [feedback #2]
    # pos_ref : (N, D) resident in VMEM (constant index_map)
    # out_ref : (1, R, D) output block for batch b
    # vbuf/pbuf: (R, D) VMEM scratch;  sems: (R,) DMA semaphores
    b = pl.program_id(0)
    R = vbuf.shape[0]

    # 1) kick off one row DMA per kept token and gather the matching pos row
    #    from the VMEM-resident table while DMAs are in flight (gather-then-add).
    def _issue(r, carry):
        row = idx_ref[b, r]
        pltpu.make_async_copy(val_hbm.at[b, pl.ds(row, 1), :],
                              vbuf.at[pl.ds(r, 1), :],
                              sems.at[r]).start()
        pbuf[pl.ds(r, 1), :] = pos_ref[pl.ds(row, 1), :]
        return carry

    lax.fori_loop(0, R, _issue, 0)

    # 2) wait for all row DMAs (descriptor only needs a matching shape).
    def _wait(r, carry):
        pltpu.make_async_copy(val_hbm.at[b, pl.ds(0, 1), :],
                              vbuf.at[pl.ds(r, 1), :],
                              sems.at[r]).wait()
        return carry

    lax.fori_loop(0, R, _wait, 0)

    # 3) single vectorized add + lane-dense (R, D) store       [feedback #8]
    out_ref[0] = (vbuf[...].astype(jnp.float32)
                  + pbuf[...].astype(jnp.float32)).astype(out_ref.dtype)


def _row_dma_call(val, pos, idx):
    B, N, D = val.shape
    R = idx.shape[-1]

    working_set = (2 * R * D + N * D + 2 * R * D) * 4
    flops = B * R * D
    bytes_accessed = 4 * (2 * B * R * D + N * D + B * R)      # only R rows of val read

    grid_spec = pltpu.PrefetchScalarGridSpec(
        num_scalar_prefetch=1,                                 # remain_idx -> SMEM
        grid=(B,),
        in_specs=[
            pl.BlockSpec(memory_space=pl.ANY),                 # val stays in HBM
            pl.BlockSpec((N, D), lambda b, idx_ref: (0, 0)),   # pos resident in VMEM
        ],
        out_specs=pl.BlockSpec((1, R, D), lambda b, idx_ref: (b, 0, 0)),
        scratch_shapes=[
            pltpu.VMEM((R, D), val.dtype),
            pltpu.VMEM((R, D), pos.dtype),
            pltpu.SemaphoreType.DMA((R,)),
        ],
    )
    return pl.pallas_call(
        _row_dma_gather_kernel,
        out_shape=jax.ShapeDtypeStruct((B, R, D), val.dtype),
        grid_spec=grid_spec,
        compiler_params=pltpu.CompilerParams(
            dimension_semantics=("parallel",),                 # batches across TCs (v7x)
            vmem_limit_bytes=_vmem_limit_bytes(working_set)),
        cost_estimate=pl.CostEstimate(flops=int(flops), transcendentals=0,
                                      bytes_accessed=int(bytes_accessed)),
    )(idx, val, pos)


def add_pos_and_gather(val, pos, remain_idx, *, use_row_dma=None):
    """val: (B, N, D), pos: (N, D), remain_idx: (B, R) int -> (B, R, D) = (val+pos)[:, idx]."""
    B, N, D = val.shape
    # clamp so a bad index can never drive an out-of-bounds DMA (argsort indices
    # are always valid; this only guards future index sources).
    idx = jnp.clip(remain_idx.astype(jnp.int32), 0, N - 1)
    if use_row_dma is None:
        use_row_dma = D >= _ROW_DMA_MIN_D                      # tiny rows: keep one-hot path
    if use_row_dma:
        return _row_dma_call(val, pos, idx)
    return _onehot_call(val, pos, idx)


# ----------------------------------------------------------------------------
# StaticRemain (JAX/Pallas port)
# ----------------------------------------------------------------------------
class StaticRemain:
    def __init__(self, config, d_model, dropout=0.0):
        self.remain_rto = config["remain_rto"]
        self.img_cols = config["img_cols"]
        self.nlp_cols = config["nlp_cols"]
        grid_size = 224 // config["patch_size"]
        self.pos_enc_2d = jnp.asarray(get_2d_sincos_pos_embed(d_model, grid_size))
        self.pe_1d = jnp.asarray(sinusoidal_pos_encoding(512, d_model))
        # dropout inside PositionalEncoding is identity at inference

    def __call__(self, data_dict, idx_dict, mask_dict, key):
        result_dict = {}
        result_dict, idx_dict, mask_dict = self.process_img(
            data_dict, result_dict, idx_dict, mask_dict, key)
        result_dict, idx_dict = self.process_nlp(data_dict, result_dict, idx_dict)
        return result_dict, idx_dict, mask_dict

    def process_img(self, data_dict, result_dict, idx_dict, mask_dict, key):
        for col in self.img_cols:
            val = data_dict[col]                                   # (B, N, D)
            B, N, D = val.shape
            revert_padding_mask = jnp.ones((B, N), jnp.float32)
            num_remain = int(N * self.remain_rto["img"])
            remain_idx, masked_idx, revert_idx = get_indices(key, (B, N), num_remain)
            # hot path: (val + pos_enc_2d) gathered along dim 1, in Pallas
            remain = add_pos_and_gather(val, self.pos_enc_2d, remain_idx)
            remain_padding_mask = jnp.take_along_axis(revert_padding_mask, remain_idx, axis=1)
            masked_padding_mask = jnp.take_along_axis(revert_padding_mask, masked_idx, axis=1)
            result_dict[f"{col}_remain"] = remain
            idx_dict[f"{col}_masked_idx"] = masked_idx
            idx_dict[f"{col}_revert_idx"] = revert_idx
            mask_dict[f"{col}_remain_padding_mask"] = remain_padding_mask
            mask_dict[f"{col}_masked_padding_mask"] = masked_padding_mask
            mask_dict[f"{col}_revert_padding_mask"] = revert_padding_mask
            # reference module returns inside the loop (first col only) -- kept
            return result_dict, idx_dict, mask_dict
        return result_dict, idx_dict, mask_dict                   # empty img_cols guard

    def process_nlp(self, data_dict, result_dict, idx_dict):
        for col in self.nlp_cols:
            val = data_dict[col]                                   # (B, S, D)
            B, S, D = val.shape
            assert S <= self.pe_1d.shape[0], "sequence longer than the 512-entry PE table"
            remain_idx = idx_dict[f"{col}_remain_idx"]
            masked_idx = idx_dict[f"{col}_masked_idx"]
            revert_idx = idx_dict[f"{col}_revert_idx"]
            # hot path: (val + sinusoidal PE) gathered along dim 1, in Pallas
            remain = add_pos_and_gather(val, self.pe_1d[:S], remain_idx)
            result_dict[f"{col}_remain"] = remain
            idx_dict[f"{col}_masked_idx"] = masked_idx
            idx_dict[f"{col}_revert_idx"] = revert_idx
            # reference module returns inside the loop (first col only) -- kept
            return result_dict, idx_dict
        return result_dict, idx_dict                               # empty nlp_cols guard


# ----------------------------------------------------------------------------
# demo / correctness check
# ----------------------------------------------------------------------------
if __name__ == "__main__":
    key = jax.random.PRNGKey(0)
    k_img, k_nlp, k_idx_img, k_idx_nlp = jax.random.split(key, 4)

    B, D = 2, 128                      # D >= 128 keeps output stores lane-dense
    patch_size = 56                    # 224 // 56 = 4  -> 16 image tokens
    N_img = (224 // patch_size) ** 2   # 16
    S_nlp = 8

    config = {
        "remain_rto": {"img": 0.5, "nlp": 0.5},
        "img_cols": ["img"],
        "nlp_cols": ["text"],
        "patch_size": patch_size,
    }

    data_dict = {
        "img": jax.random.normal(k_img, (B, N_img, D), jnp.float32),
        "text": jax.random.normal(k_nlp, (B, S_nlp, D), jnp.float32),
    }

    # nlp indices are supplied by the caller (as in the reference forward)
    nlp_remain = int(S_nlp * config["remain_rto"]["nlp"])
    t_rem, t_msk, t_rev = get_indices(k_idx_nlp, (B, S_nlp), nlp_remain)
    idx_dict = {"text_remain_idx": t_rem, "text_masked_idx": t_msk, "text_revert_idx": t_rev}
    mask_dict = {}

    module = StaticRemain(config, d_model=D, dropout=0.0)
    result_dict, idx_dict, mask_dict = module(data_dict, idx_dict, mask_dict, k_idx_img)
    jax.block_until_ready(result_dict["img_remain"])
    jax.block_until_ready(result_dict["text_remain"])

    # pure-JAX reference for the Pallas hot path
    def ref_gather(val, pos, idx):
        x = val + pos[None]
        return jnp.take_along_axis(x, idx[..., None].astype(jnp.int32), axis=1)

    img_rem_idx, _, _ = get_indices(k_idx_img, (B, N_img),
                                    int(N_img * config["remain_rto"]["img"]))
    ref_img = ref_gather(data_dict["img"], module.pos_enc_2d, img_rem_idx)
    ref_txt = ref_gather(data_dict["text"], module.pe_1d[:S_nlp], t_rem)

    assert jnp.allclose(result_dict["img_remain"], ref_img, atol=1e-5, rtol=1e-5)
    assert jnp.allclose(result_dict["text_remain"], ref_txt, atol=1e-5, rtol=1e-5)
    assert result_dict["img_remain"].shape == (B, int(N_img * 0.5), D)
    assert result_dict["text_remain"].shape == (B, nlp_remain, D)
    assert mask_dict["img_revert_padding_mask"].shape == (B, N_img)

    # also exercise the index-driven row-DMA path (auto-selected for D >= 256)
    dma_img = add_pos_and_gather(data_dict["img"], module.pos_enc_2d,
                                 img_rem_idx, use_row_dma=True)
    dma_txt = add_pos_and_gather(data_dict["text"], module.pe_1d[:S_nlp],
                                 t_rem, use_row_dma=True)
    jax.block_until_ready(dma_img)
    jax.block_until_ready(dma_txt)
    assert jnp.allclose(dma_img, ref_img, atol=1e-5, rtol=1e-5)
    assert jnp.allclose(dma_txt, ref_txt, atol=1e-5, rtol=1e-5)

    print("KERNEL_OK")
</pallas_src>

<mosaic_0001>
module attributes {stable_mosaic.version = 11 : i64} {
  func.func @_onehot_gather_kernel(%arg0: i32, %arg1: memref<2x8x1xi32, #tpu.memory_space<vmem>>, %arg2: memref<2x16x128xf32, #tpu.memory_space<vmem>>, %arg3: memref<16x128xf32, #tpu.memory_space<vmem>>, %arg4: memref<2x8x128xf32, #tpu.memory_space<vmem>>) attributes {dimension_semantics = [#tpu.dimension_semantics<parallel>], iteration_bounds = array<i64: 1>, scalar_prefetch = 0 : i64, scratch_operands = 0 : i64, tpu.core_type = #tpu.core_type<tc>, window_params = [{transform_indices = @transform_0, window_bounds = array<i64: 2, 8, 1>}, {transform_indices = @transform_1, window_bounds = array<i64: 2, 16, 128>}, {pipeline_mode = #tpu.pipeline_mode<synchronous>, transform_indices = @transform_2, window_bounds = array<i64: 16, 128>}, {transform_indices = @transform_3, window_bounds = array<i64: 2, 8, 128>}]} {
    %c0 = arith.constant 0 : index
    %c0_0 = arith.constant 0 : index
    %c0_1 = arith.constant 0 : index
    %0 = vector.load %arg1[%c0, %c0_0, %c0_1] : memref<2x8x1xi32, #tpu.memory_space<vmem>>, vector<2x8x1xi32>
    %1 = tpu.iota {dimensions = array<i32: 2>} : vector<2x8x16xi32>
    %2 = vector.broadcast %0 : vector<2x8x1xi32> to vector<2x8x16xi32>
    %3 = arith.cmpi eq, %1, %2 : vector<2x8x16xi32>
    %4 = arith.extui %3 : vector<2x8x16xi1> to vector<2x8x16xi32>
    %5 = arith.sitofp %4 : vector<2x8x16xi32> to vector<2x8x16xf32>
    %c0_2 = arith.constant 0 : index
    %c0_3 = arith.constant 0 : index
    %c0_4 = arith.constant 0 : index
    %6 = vector.load %arg2[%c0_2, %c0_3, %c0_4] : memref<2x16x128xf32, #tpu.memory_space<vmem>>, vector<2x16x128xf32>
    "tpu.trace_start"() <{level = 10 : i32, message = "brn,bnd->brd"}> : () -> ()
    %cst = arith.constant dense<0.000000e+00> : vector<2x8x128xf32>
    %7 = tpu.matmul %5, %6, %cst {dimension_numbers = #tpu.dot_dimension_numbers<[2], [1], [1], [2], [0, 0, 0, 1, 1, 2], [0], [0]>} : vector<2x8x16xf32>, vector<2x16x128xf32>, vector<2x8x128xf32> -> vector<2x8x128xf32>
    "tpu.trace_stop"() : () -> ()
    %8 = vector.shape_cast %5 : vector<2x8x16xf32> to vector<16x16xf32>
    %c0_5 = arith.constant 0 : index
    %c0_6 = arith.constant 0 : index
    %9 = vector.load %arg3[%c0_5, %c0_6] : memref<16x128xf32, #tpu.memory_space<vmem>>, vector<16x128xf32>
    %cst_7 = arith.constant dense<0.000000e+00> : vector<16x128xf32>
    %10 = tpu.matmul %8, %9, %cst_7 {dimension_numbers = #tpu.dot_dimension_numbers<[1], [0], [0], [1], [0, 0, 1, 1], [], []>} : vector<16x16xf32>, vector<16x128xf32>, vector<16x128xf32> -> vector<16x128xf32>
    %11 = vector.shape_cast %10 : vector<16x128xf32> to vector<2x8x128xf32>
    %12 = arith.addf %7, %11 : vector<2x8x128xf32>
    %c0_8 = arith.constant 0 : index
    %c0_9 = arith.constant 0 : index
    %c0_10 = arith.constant 0 : index
    %13 = vector.load %arg4[%c0_8, %c0_9, %c0_10] : memref<2x8x128xf32, #tpu.memory_space<vmem>>, vector<2x8x128xf32>
    tpu.vector_store %arg4[%c0_8, %c0_9, %c0_10], %12 {strides = array<i32>} : memref<2x8x128xf32, #tpu.memory_space<vmem>>, vector<2x8x128xf32>,
    return
  }
  func.func @transform_0(%arg0: i32) -> (i32, i32, i32) {
    %c0_i32 = arith.constant 0 : i32
    %c0_i32_0 = arith.constant 0 : i32
    %c0_i32_1 = arith.constant 0 : i32
    return %arg0, %c0_i32, %c0_i32_0 : i32, i32, i32
  }
  func.func @transform_1(%arg0: i32) -> (i32, i32, i32) {
    %c0_i32 = arith.constant 0 : i32
    %c0_i32_0 = arith.constant 0 : i32
    %c0_i32_1 = arith.constant 0 : i32
    return %arg0, %c0_i32, %c0_i32_0 : i32, i32, i32
  }
  func.func @transform_2(%arg0: i32) -> (i32, i32) {
    %c0_i32 = arith.constant 0 : i32
    %c0_i32_0 = arith.constant 0 : i32
    %c0_i32_1 = arith.constant 0 : i32
    return %c0_i32, %c0_i32_0 : i32, i32
  }
  func.func @transform_3(%arg0: i32) -> (i32, i32, i32) {
    %c0_i32 = arith.constant 0 : i32
    %c0_i32_0 = arith.constant 0 : i32
    %c0_i32_1 = arith.constant 0 : i32
    return %arg0, %c0_i32, %c0_i32_0 : i32, i32, i32
  }
}

</mosaic_0001>

<bundles_post_ra>
// kernel: tpu_custom_call.1
= control target key start
LH: loop header
LB: loop body
LE: loop exit
PB: predicated region body
PF: predicated region fallthrough
CT: control target
= control target key end

     0   :  { %8 = vsyncpa [#allocation3], 0  ;;  %s434_s0 = inlined_call_operand.vmem [shape: s32[2,8,1], index: 0, kind: input, shape index: {}]   ;;  %s435_s1 = inlined_call_operand.hbm [shape: f32[2,16,128], index: 1, kind: input, shape index: {}]   ;;  %s436_s2 = inlined_call_operand.vmem [shape: f32[16,128], index: 2, kind: input, shape index: {}]   ;;  %s437_s3 = inlined_call_operand.hbm [shape: f32[2,8,128], index: 3, kind: output, shape index: {}]  }
   0x1   :  { %9 = vsyncpa [#allocation4], 0  ;;  %s381_s12 = smov [#allocation2]  }
   0x2   :  { %s17_s13 = sshll.u32 %s381_s12, 4  ;;  %s18_s13 = int_to_ptr.vmem [resolvable:$true] %s17_s13 }
   0x3   :  { %s345_s14 = scalar_lea.vmem %s18_s13, 512  ;;  %p350_p1 = scmp.lt.s32.totalorder %s18_s13, %s18_s13 }
   0x4   :  { %p346_p0 = scmp.ne.s32.totalorder %s18_s13, %s345_s14  ;;  %p351_p2 = scmp.lt.s32.totalorder %s345_s14, %s345_s14 }
   0x6   :  { %p352_p3 = por %p351_p2, %p350_p1 }
   0x8   :  { %p353_p4 = pnand %p352_p3, %p346_p0 }
   0xa   :  { %356 = shalt.err (!%p353_p4)
}
   0xb   :  { %s382_s15 = smov 128   ;;  %s383_s16 = smov 8  }
   0xc   :  { %23 = dma.hbm_to_vmem [thread:$0]  %s435_s1, 512, %s18_s13, [#allocation3], %s382_s15, %s382_s15, %s383_s16  }
   0xd   :  { %377 = dma.done.wait [#allocation3], 512  }
   0xe   :  { %378 = vsyncadd [#allocation3], 4294966784  ;;  %v384_v0 = vmov 0   ;;  %v385_v1 = vmov 0.0   ;;  %vm386_vm0 = vmmov 0   ;;  %v29_v2 = vld [vmem:[%s434_s0] sm:$0xff]  ;;  %v31_v8 = vlaneseq }
   0xf   :  { %336 = vset.pattern.permute.xlu0 %v384_v0  ;;  %315 = vmatprep.subr.mxu1 %v385_v1  ;;  %v46_v3 = vld [vmem:[#allocation2 + $0x8] sm:$0xff]  ;;  %v50_v4 = vld [vmem:[%s436_s2 + $0x8] sm:$0xff]  ;;  %v45_v5 = vld [vmem:[#allocation2] sm:$0xff]  ;;  %vm51_vm1 = vcmask 130048  }
  0x10   :  { %319 = vmatprep.mubr.msk.f32.mxu1 %vm386_vm0, %v385_v1  ;;  %34 = vperm.xlu0 %336, %v29_v2   ;;  %v49_v6 = vld [vmem:[%s436_s2] sm:$0xff]  ;;  %v30_v7 = vld [vmem:[%s434_s0 + $0x8] sm:$0xff]  ;;  %v32_v9 = vand.u32 127, %v31_v8  ;;  %s387_s0 = smov [#allocation5]  }
  0x11   :  { %316 = vmatpush3.msra.mxu1 %v46_v3  ;;  %308 = vmatprep.subr.mxu0 %v50_v4  ;;  %v48_v13 = vld [vmem:[#allocation2 + $0x18] sm:$0xff]  ;;  %v47_v15 = vld [vmem:[#allocation2 + $0x10] sm:$0xff]  ;;  %s280_s2 = sshll.u32 %s387_s0, 4  ;;  %s281_s2 = int_to_ptr.vmem [resolvable:$true] %s280_s2 }
  0x12   :  { %317 = vmatprep.subr.mxu1 %v385_v1  ;;  %309 = vmatpush3.msra.mxu0 %v50_v4  ;;  %s357_s26 = scalar_lea.vmem %s281_s2, 256  ;;  %p362_p6 = scmp.lt.s32.totalorder %s281_s2, %s281_s2 }
  0x13   :  { %318 = vmatpush3.msra.mxu1 %v45_v5  ;;  %310 = vmatprep.subr.mxu0 %v49_v6  ;;  %p358_p5 = scmp.ne.s32.totalorder %s281_s2, %s357_s26  ;;  %p363_p7 = scmp.lt.s32.totalorder %s357_s26, %s357_s26 }
  0x14   :  { %37 = vperm.xlu0 %336, %v30_v7   ;;  %311 = vmatpush3.msra.mxu0 %v49_v6 }
  0x15   :  { %322 = vmatprep.subr.mxu0 %v385_v1  ;;  %p364_p8 = por %p363_p7, %p362_p6 }
  0x17   :  { %p365_p9 = pnand %p364_p8, %p358_p5 }
  0x8b   :  { %v35_v10 = vpop.permute.xlu0 %34 }
  0x8c   :  { %vm39_vm2 = vcmp.eq.s32.totalorder %v32_v9, %v35_v10 }
  0x8d   :  { %v292_v11 = vsel %vm39_vm2, 1.0, %v385_v1 }
  0x8e   :  { %312 = vmatprep.mubr.msk.f32.mxu0 %vm51_vm1, %v292_v11  ;;  %320 = vmatmul.mubr.msk.f32.vlgmr.msra.gmra.mxu1 %vm51_vm1, %v292_v11 }
  0x8f   :  { %v38_v12 = vpop.permute.xlu0 %37 }
  0x90   :  { %vm40_vm3 = vcmp.eq.s32.totalorder %v32_v9, %v38_v12 }
  0x91   :  { %v293_v14 = vsel %vm40_vm3, 1.0, %v385_v1 }
  0x92   :  { %313 = vmatmul.mubr.msk.f32.vlgmr.msra.gmra.mxu0 %vm51_vm1, %v293_v14 }
  0x93   :  { %323 = vmatpush3.msra.mxu0 %v48_v13  ;;  %326 = vmatprep.mubr.msk.f32.mxu0 %vm386_vm0, %v385_v1 }
  0x94   :  { %324 = vmatprep.subr.mxu0 %v385_v1 }
  0x95   :  { %325 = vmatpush3.msra.mxu0 %v47_v15 }
  0x96   :  { %327 = vmatmul.mubr.msk.f32.vlgmr.msra.gmra.mxu0 %vm51_vm1, %v293_v14 }
 0x14e   :  { %v199_v16 = vpop.f32.mrf.mxu1 }
 0x150   :  { %v321_v17 = vpop.f32.mrf.mxu1 }
 0x152   :  { %v314_v18 = vpop.f32.mrf.mxu0 }
 0x154   :  { %v124_v19 = vpop.f32.mrf.mxu0 }
 0x155   :  { %v200_v20 = vadd.f32 %v199_v16, %v124_v19 }
 0x156   :  { %v269_v21 = vpop.f32.mrf.mxu0 }
 0x157   :  { %273 = vst [vmem:[#allocation5] sm:$0xff] %v200_v20  ;;  %v270_v22 = vadd.f32 %v314_v18, %v269_v21 }
 0x158   :  { %v328_v23 = vpop.f32.mrf.mxu0 }
 0x159   :  { %274 = vst [vmem:[#allocation5 + $0x8] sm:$0xff] %v270_v22 }
 0x15a   :  { %368 = shalt.err (!%p365_p9)
}
 0x15b   :  { %286 = dma.vmem_to_hbm [thread:$0]  %s281_s2, 256, %s437_s3, [#allocation4], %s382_s15, %s382_s15, %s383_s16  }
 0x15c   :  { %379 = dma.done.wait [#allocation4], 256  }
 0x15d   :  { %380 = vsyncadd [#allocation4], 4294967040 }
 0x15e   :  { %290 = vsyncpa [#allocation3], 1 }
 0x15f   :  { %291 = vsyncpa [#allocation4], 1 }

</bundles_post_ra>
